<compile_context>
chip_gen: v7x
topology: tpu7x:2x2x1
jax: 0.10.0
libtpu: 0.0.40
codegen_flags: <defaults>
</compile_context>

<pallas_src>
import functools

import jax
import jax.numpy as jnp
import numpy as np
from jax.experimental import pallas as pl
from jax.experimental.pallas import tpu as pltpu

_LANE = 128
_SUBLANE = 8


def _round_up(x, m):
    return -(-x // m) * m


def pfn_kernel(x_ref, w_ref, shift_ref, *out_refs, tile_n, num_points, units, mode):
    """One voxel tile: (BN-folded) linear + ReLU + per-voxel max (+ concat).

    x_ref:     (tile_n*M, Cin) input rows, one voxel = M consecutive rows,
               native I/O dtype (f32 or bf16 goes straight to the MXU).
    w_ref:     (Cin, U)  linear weight^T with eval-BN scale folded in.
    shift_ref: (1, U)    folded BN shift = beta - mean*scale (f32).
    out_refs:  mode == 'concat'  : (tile_n*M, 2U)
               mode == 'split'   : (tile_n*M, U), (tile_n, U)
               mode == 'max_only': (tile_n, U)
    """
    # MXU matmul in the operand dtype (bf16-native on v5e/v6e/v7x), f32 accumulate.
    y = jnp.dot(x_ref[...], w_ref[...], preferred_element_type=jnp.float32)  # (rows, U)
    # Folded BN shift + ReLU on the VPU (f32).
    y = jnp.maximum(y + shift_ref[...], 0.0)
    # Regroup rows into voxels.  With M == 8 this reshape is a layout no-op (each
    # (8,128) vreg tile already holds exactly one voxel's points); for other M it
    # is a sublane regroup ahead of the per-voxel max.
    y3 = y.reshape(tile_n, num_points, units)                                # (TN, M, U)

    if mode == "concat":
        (out_ref,) = out_refs
        y_max = jnp.max(y3, axis=1, keepdims=True)                           # (TN, 1, U)
        y_rep = jnp.broadcast_to(y_max, y3.shape)                            # (TN, M, U)
        out3 = jnp.concatenate([y3, y_rep], axis=-1)                         # (TN, M, 2U)
        out_ref[...] = out3.reshape(tile_n * num_points,
                                    2 * units).astype(out_ref.dtype)
    else:
        y_max = jnp.max(y3, axis=1)                                          # (TN, U)
        if mode == "split":
            y_ref, m_ref = out_refs
            y_ref[...] = y.astype(y_ref.dtype)
            m_ref[...] = y_max.astype(m_ref.dtype)
        else:  # "max_only" (last_layer=True)
            (m_ref,) = out_refs
            m_ref[...] = y_max.astype(m_ref.dtype)


def _pick_tile_n(N, M, Cin, U, itemsize, mode, requested=None,
                 block_vmem_budget=24 * 2**20, min_grid_steps=4):
    """Voxels per grid step, from the double-buffered, lane-padded VMEM footprint."""
    lanes_in = _round_up(Cin, _LANE)
    if mode == "concat":
        out_lane_words = M * _round_up(2 * U, _LANE)
    elif mode == "split":
        out_lane_words = M * _round_up(U, _LANE) + _round_up(U, _LANE)
    else:  # "max_only"
        out_lane_words = _round_up(U, _LANE)
    # 2x for the double-buffered pipelined blocks; everything is 128-lane padded
    # in VMEM regardless of Cin / U (see block-diagonal TODO above).
    per_voxel_bytes = 2 * itemsize * (M * lanes_in + out_lane_words)

    if requested is not None:
        tile_n = int(requested)                      # explicit override (v5e/v6e can go big)
    else:
        tile_n = max(1, block_vmem_budget // per_voxel_bytes)
        # Keep several grid steps: shards across v7x's two TensorCores and keeps
        # the DMA/compute pipeline busy (no effect on single-TC v5e/v6e).
        tile_n = min(tile_n, pl.cdiv(N, min_grid_steps))
    tile_n = max(1, min(tile_n, N))

    if tile_n < N:
        # Partial-array blocks need their second-minor dim sublane aligned
        # (8 for 32-bit dtypes, 16 for 16-bit); full-array blocks are exempt.
        sub = _SUBLANE * max(1, 4 // itemsize)
        tile_n = max(sub, (tile_n // sub) * sub)
        if tile_n >= N:
            tile_n = N
    return tile_n, per_voxel_bytes


def pfn_layer_forward(inputs, weight, gamma, beta, running_mean, running_var,
                      eps=1e-3, tile_n=None, last_layer=False, concat_output=True):
    """PFNLayer forward (mode='max', eval-mode BatchNorm1d folded into the matmul).

    inputs: (N, M, Cin) f32 or bf16 (output dtype follows input dtype).
    weight: (U, Cin) nn.Linear weight (no bias).

    Returns:
      last_layer=True                     -> x_max                (N, 1, U)
      last_layer=False, concat_output     -> concat([x, x_max.repeat(M)], -1) (N, M, 2U)
      last_layer=False, not concat_output -> (x (N, M, U), x_max (N, 1, U))
                                             [~47% less HBM write traffic]
    """
    N, M, Cin = inputs.shape
    U = weight.shape[0]
    io_dtype = inputs.dtype
    itemsize = np.dtype(io_dtype).itemsize

    # Fold eval-mode BN into the weight and a per-channel shift (tiny, plain JAX).
    scale = (gamma / jnp.sqrt(running_var + eps)).astype(jnp.float32)         # (U,)
    w_fold = weight.astype(jnp.float32).T * scale[None, :]                    # (Cin, U)
    shift = (beta - running_mean * scale).reshape(1, U).astype(jnp.float32)   # (1, U)
    if io_dtype == jnp.bfloat16:
        # bf16 operands straight to the MXU: no full-tile VPU upcast, half the
        # LHS vreg/VMEM pressure; accumulation stays f32.
        w_fold = w_fold.astype(jnp.bfloat16)

    mode = "max_only" if last_layer else ("concat" if concat_output else "split")
    tile_n, per_voxel_bytes = _pick_tile_n(N, M, Cin, U, itemsize, mode,
                                           requested=tile_n)
    rows_per_tile = tile_n * M
    # Ragged tail handled by Pallas partial-block masking: no padded input copy.
    grid = (pl.cdiv(N, tile_n),)

    x_rows = inputs.reshape(N * M, Cin)          # free (contiguous) reshape

    in_specs = [
        pl.BlockSpec((rows_per_tile, Cin), lambda i: (i, 0)),
        pl.BlockSpec((Cin, U), lambda i: (0, 0)),
        pl.BlockSpec((1, U), lambda i: (0, 0)),
    ]
    if mode == "concat":
        out_shape = jax.ShapeDtypeStruct((N * M, 2 * U), io_dtype)
        out_specs = pl.BlockSpec((rows_per_tile, 2 * U), lambda i: (i, 0))
        out_bytes = N * M * 2 * U * itemsize
    elif mode == "split":
        out_shape = (jax.ShapeDtypeStruct((N * M, U), io_dtype),
                     jax.ShapeDtypeStruct((N, U), io_dtype))
        out_specs = (pl.BlockSpec((rows_per_tile, U), lambda i: (i, 0)),
                     pl.BlockSpec((tile_n, U), lambda i: (i, 0)))
        out_bytes = (N * M * U + N * U) * itemsize
    else:  # max_only
        out_shape = jax.ShapeDtypeStruct((N, U), io_dtype)
        out_specs = pl.BlockSpec((tile_n, U), lambda i: (i, 0))
        out_bytes = N * U * itemsize

    in_bytes = (N * M * Cin * itemsize
                + w_fold.size * np.dtype(w_fold.dtype).itemsize + shift.size * 4)
    cost = pl.CostEstimate(flops=2 * N * M * Cin * U, transcendentals=0,
                           bytes_accessed=in_bytes + out_bytes)

    # Auto mode keeps blocks ~24 MiB double-buffered -> 40 MiB scoped limit fits
    # v7x (64 MiB physical) with headroom and clears v5e's 16 MiB default; explicit
    # large tile_n (v5e/v6e, 128 MiB VMEM) raises the limit with the actual need.
    vmem_need = per_voxel_bytes * tile_n + 8 * 2**20
    vmem_limit = int(min(100 * 2**20, max(40 * 2**20, vmem_need)))

    out = pl.pallas_call(
        functools.partial(pfn_kernel, tile_n=tile_n, num_points=M, units=U, mode=mode),
        out_shape=out_shape,
        grid_spec=pltpu.PrefetchScalarGridSpec(
            num_scalar_prefetch=0,
            grid=grid,
            in_specs=in_specs,
            out_specs=out_specs,
        ),
        compiler_params=pltpu.CompilerParams(
            dimension_semantics=("parallel",),   # independent voxel tiles
            vmem_limit_bytes=vmem_limit,
        ),
        cost_estimate=cost,
    )(x_rows, w_fold, shift)

    if mode == "concat":
        return out.reshape(N, M, 2 * U)          # free (contiguous) reshape
    if mode == "split":
        y, y_max = out
        return y.reshape(N, M, U), y_max.reshape(N, 1, U)
    return out.reshape(N, 1, U)


def pfn_layer_reference(inputs, weight, gamma, beta, running_mean, running_var,
                        eps=1e-3):
    x = jnp.einsum("nmc,uc->nmu", inputs, weight)
    x = (x - running_mean) / jnp.sqrt(running_var + eps) * gamma + beta
    x = jnp.maximum(x, 0.0)
    x_max = jnp.max(x, axis=1, keepdims=True)
    x_rep = jnp.broadcast_to(x_max, x.shape)
    return jnp.concatenate([x, x_rep], axis=-1)


if __name__ == "__main__":
    key = jax.random.PRNGKey(0)
    k_in, k_w, k_g, k_b, k_m, k_v = jax.random.split(key, 6)

    # Small PFN-consistent shapes: N voxels (ragged vs the tile), M points per voxel,
    # Cin point features (~9 in PointPillars), out_channels=32 -> U=16 (not last layer).
    N, M, Cin = 37, 8, 9
    out_channels = 32
    U = out_channels // 2
    eps = 1e-3                        # norm_cfg eps=0.001

    inputs = jax.random.normal(k_in, (N, M, Cin), dtype=jnp.float32)
    weight = jax.random.normal(k_w, (U, Cin), dtype=jnp.float32) * 0.1
    gamma = 1.0 + 0.1 * jax.random.normal(k_g, (U,), dtype=jnp.float32)
    beta = 0.1 * jax.random.normal(k_b, (U,), dtype=jnp.float32)
    running_mean = 0.05 * jax.random.normal(k_m, (U,), dtype=jnp.float32)
    running_var = 1.0 + 0.1 * jax.nn.softplus(
        jax.random.normal(k_v, (U,), dtype=jnp.float32))

    ref = pfn_layer_reference(inputs, weight, gamma, beta,
                              running_mean, running_var, eps=eps)

    # --- default module semantics: concat output, f32, ragged N (37 % 8 != 0),
    #     multi-step grid, no padded input copy ---
    out = pfn_layer_forward(inputs, weight, gamma, beta,
                            running_mean, running_var, eps=eps, tile_n=8)
    out = jax.block_until_ready(out)
    np.testing.assert_allclose(np.asarray(out), np.asarray(ref),
                               rtol=1e-4, atol=1e-5)

    # --- auto tile size (VMEM-budget / megacore aware) ---
    out_auto = pfn_layer_forward(inputs, weight, gamma, beta,
                                 running_mean, running_var, eps=eps)
    out_auto = jax.block_until_ready(out_auto)
    np.testing.assert_allclose(np.asarray(out_auto), np.asarray(ref),
                               rtol=1e-4, atol=1e-5)

    # --- split outputs: ~47% less HBM write traffic than the concatenated form ---
    y_split, ymax_split = pfn_layer_forward(inputs, weight, gamma, beta,
                                            running_mean, running_var, eps=eps,
                                            tile_n=16, concat_output=False)
    y_split = jax.block_until_ready(y_split)
    np.testing.assert_allclose(np.asarray(y_split), np.asarray(ref[..., :U]),
                               rtol=1e-4, atol=1e-5)
    np.testing.assert_allclose(np.asarray(ymax_split), np.asarray(ref[:, :1, U:]),
                               rtol=1e-4, atol=1e-5)

    # --- last_layer=True: only the pooled features are computed/written ---
    ymax_last = pfn_layer_forward(inputs, weight, gamma, beta,
                                  running_mean, running_var, eps=eps,
                                  tile_n=8, last_layer=True)
    ymax_last = jax.block_until_ready(ymax_last)
    np.testing.assert_allclose(np.asarray(ymax_last), np.asarray(ref[:, :1, U:]),
                               rtol=1e-4, atol=1e-5)

    # --- bf16 HBM I/O: bf16 operands straight to the MXU, f32 accumulate ---
    inputs_bf16 = inputs.astype(jnp.bfloat16)
    out_bf16 = pfn_layer_forward(inputs_bf16, weight, gamma, beta,
                                 running_mean, running_var, eps=eps)
    out_bf16 = jax.block_until_ready(out_bf16)
    ref_bf16 = pfn_layer_reference(inputs_bf16.astype(jnp.float32), weight, gamma,
                                   beta, running_mean, running_var, eps=eps)
    np.testing.assert_allclose(np.asarray(out_bf16.astype(jnp.float32)),
                               np.asarray(ref_bf16), rtol=2e-2, atol=2e-2)

    print("KERNEL_OK")
</pallas_src>

<mosaic_0001>
module attributes {stable_mosaic.version = 11 : i64} {
  func.func @pfn_kernel(%arg0: i32, %arg1: memref<64x9xf32, #tpu.memory_space<vmem>>, %arg2: memref<9x16xf32, #tpu.memory_space<vmem>>, %arg3: memref<1x16xf32, #tpu.memory_space<vmem>>, %arg4: memref<64x32xf32, #tpu.memory_space<vmem>>) attributes {dimension_semantics = [#tpu.dimension_semantics<parallel>], iteration_bounds = array<i64: 5>, scalar_prefetch = 0 : i64, scratch_operands = 0 : i64, tpu.core_type = #tpu.core_type<tc>, window_params = [{transform_indices = @transform_0, window_bounds = array<i64: 64, 9>}, {pipeline_mode = #tpu.pipeline_mode<synchronous>, transform_indices = @transform_1, window_bounds = array<i64: 9, 16>}, {pipeline_mode = #tpu.pipeline_mode<synchronous>, transform_indices = @transform_2, window_bounds = array<i64: 1, 16>}, {transform_indices = @transform_3, window_bounds = array<i64: 64, 32>}]} {
    %c0 = arith.constant 0 : index
    %c0_0 = arith.constant 0 : index
    %0 = vector.load %arg1[%c0, %c0_0] : memref<64x9xf32, #tpu.memory_space<vmem>>, vector<64x9xf32>
    %c0_1 = arith.constant 0 : index
    %c0_2 = arith.constant 0 : index
    %1 = vector.load %arg2[%c0_1, %c0_2] : memref<9x16xf32, #tpu.memory_space<vmem>>, vector<9x16xf32>
    %cst = arith.constant dense<0.000000e+00> : vector<64x16xf32>
    %2 = tpu.matmul %0, %1, %cst {dimension_numbers = #tpu.dot_dimension_numbers<[1], [0], [0], [1], [0, 0, 1, 1], [], []>} : vector<64x9xf32>, vector<9x16xf32>, vector<64x16xf32> -> vector<64x16xf32>
    %c0_3 = arith.constant 0 : index
    %c0_4 = arith.constant 0 : index
    %3 = vector.load %arg3[%c0_3, %c0_4] : memref<1x16xf32, #tpu.memory_space<vmem>>, vector<1x16xf32>
    %4 = vector.broadcast %3 : vector<1x16xf32> to vector<64x16xf32>
    %5 = arith.addf %2, %4 : vector<64x16xf32>
    %cst_5 = arith.constant 0.000000e+00 : f32
    %6 = vector.broadcast %cst_5 : f32 to vector<64x16xf32>
    %7 = arith.maximumf %5, %6 : vector<64x16xf32>
    %8 = vector.shape_cast %7 : vector<64x16xf32> to vector<8x8x16xf32>
    %cst_6 = arith.constant dense<0xFF800000> : vector<8x16xf32>
    %9 = vector.multi_reduction <maximumf>, %8, %cst_6 [1] : vector<8x8x16xf32> to vector<8x16xf32>
    %10 = vector.shape_cast %9 : vector<8x16xf32> to vector<8x1x16xf32>
    %11 = vector.shape_cast %10 : vector<8x1x16xf32> to vector<8x1x16xf32>
    %12 = vector.broadcast %11 : vector<8x1x16xf32> to vector<8x8x16xf32>
    %13 = tpu.concatenate %8, %12 in 2 : vector<8x8x16xf32>, vector<8x8x16xf32> -> vector<8x8x32xf32>
    %14 = vector.shape_cast %13 : vector<8x8x32xf32> to vector<64x32xf32>
    %c0_7 = arith.constant 0 : index
    %c0_8 = arith.constant 0 : index
    %15 = vector.load %arg4[%c0_7, %c0_8] : memref<64x32xf32, #tpu.memory_space<vmem>>, vector<64x32xf32>
    tpu.vector_store %arg4[%c0_7, %c0_8], %14 {strides = array<i32>} : memref<64x32xf32, #tpu.memory_space<vmem>>, vector<64x32xf32>,
    return
  }
  func.func @transform_0(%arg0: i32) -> (i32, i32) {
    %c0_i32 = arith.constant 0 : i32
    %c0_i32_0 = arith.constant 0 : i32
    return %arg0, %c0_i32 : i32, i32
  }
  func.func @transform_1(%arg0: i32) -> (i32, i32) {
    %c0_i32 = arith.constant 0 : i32
    %c0_i32_0 = arith.constant 0 : i32
    %c0_i32_1 = arith.constant 0 : i32
    return %c0_i32, %c0_i32_0 : i32, i32
  }
  func.func @transform_2(%arg0: i32) -> (i32, i32) {
    %c0_i32 = arith.constant 0 : i32
    %c0_i32_0 = arith.constant 0 : i32
    %c0_i32_1 = arith.constant 0 : i32
    return %c0_i32, %c0_i32_0 : i32, i32
  }
  func.func @transform_3(%arg0: i32) -> (i32, i32) {
    %c0_i32 = arith.constant 0 : i32
    %c0_i32_0 = arith.constant 0 : i32
    return %arg0, %c0_i32 : i32, i32
  }
}

</mosaic_0001>

<bundles_post_ra>
// kernel: tpu_custom_call.1
= control target key start
LH: loop header
LB: loop body
LE: loop exit
PB: predicated region body
PF: predicated region fallthrough
CT: control target
= control target key end

     0   :  { %s971_s12 = smov 0   ;;  %s973_s13 = smov 0   ;;  %s1177_s0 = inlined_call_operand.vmem [shape: f32[296,9], index: 0, kind: input, shape index: {}]   ;;  %s1178_s1 = inlined_call_operand.vmem [shape: f32[9,16], index: 1, kind: input, shape index: {}]   ;;  %s1179_s2 = inlined_call_operand.vmem [shape: f32[1,16], index: 2, kind: input, shape index: {}]   ;;  %s1180_s3 = inlined_call_operand.vmem [shape: f32[296,32], index: 3, kind: output, shape index: {}]  }
   0x1   :  { %s975_s14 = smov 0  }
   0x2 LB: > { %s984_s15 = sadd.s32 4294967295, %s915_s14   ;;  %s986_s16 = sadd.s32 1, %s915_s14   ;;  %s915_s14 = sphi %s975_s14, %s1187_s14   ;;  %s911_s13 = sphi %s973_s13, %s1186_s13   ;;  %s907_s12 = sphi %s971_s12, %s1185_s12  }
   0x3   : > { %s85_s17 = ssub.s32 %s915_s14, %s986_s16  ;;  %s88_s18 = sadd.s32 1, %s911_s13 }
   0x4   : > { %p86_p0 = scmp.eq.s32.totalorder %s85_s17, 0  ;;  %p98_p1 = scmp.ne.s32.totalorder %s911_s13, %s907_s12 }
   0x5   : > { %p99_p2 = scmp.eq.s32.totalorder %s984_s15, 4  ;;  %p703_p3 = scmp.ge.s32.totalorder %s915_s14, 1 }
   0x6   : > { %s994_s19 = scalar_select %p86_p0, %s911_s13, %s88_s18  }
   0x7   : > { %p996_p4 = por %p99_p2, %p98_p1  ;;  %p146_p5 = scmp.lt.s32.totalorder %s915_s14, 6 }
   0x9   : > { %p147_p6 = pnand %p703_p3, %p146_p5 }
   0xa   : > { %v200_v0 = vld [vmem:[%s1178_s1] sm:$0xff] (!%p147_p6)  ;;  %v201_v1 = vld [vmem:[%s1178_s1 + $0x8] sm:$0x1] (!%p147_p6)  ;;  %vm234_vm0 = vcmask (!%p147_p6), 1040384   ;;  %s1007_s25 = sshll.u32 (!%p147_p6), %s984_s15, 3  ;;  %vm949_vm1 = vmmov (!%p147_p6), 1  }
   0xb   : > { %150 = sbr.rel (%p147_p6) target bundleno = 433 (0x1b1), region = 32  ;;  %v763_v2 = vpack.c.bf16 (!%p147_p6), %v201_v1, %v200_v0  ;;  %vm764_vm2 = vmpackc.low (!%p147_p6), %vm234_vm0, %vm949_vm1  ;;  %p178_p7 = scmp.lt.s32.totalorder (!%p147_p6), %s1007_s25, 36  ;;  %vm209_vm3 = vcmask (!%p147_p6), 72704   ;;  %v707_v11 = vld [vmem:[%s1179_s2] ss:$0 sm:$0xff] (!%p147_p6)  ;;  %vm351_vm4 = vcmask (!%p147_p6), 130048  }
   0xc   : > { %s950_s6 = smov (!%p147_p6), 16   ;;  %s170_s7 = sand.u32 (!%p147_p6), 1, %s907_s12   ;;  %vm448_vm5 = vcmask (!%p147_p6), 261120  }
   0xd   : > { %765 = vmatprep.subr.msk.bf16.mxu0 (!%p147_p6), %vm764_vm2, %v763_v2  ;;  %769 = vmatprep.subr.msk.bf16.mxu1 (!%p147_p6), %vm764_vm2, %v763_v2  ;;  %s704_s8 = sshll.u32 (!%p147_p6), %s170_s7, 6 }
   0xe   : > { %768 = vmatpush3.bf16.msk.msra.mxu0 (!%p147_p6), %vm764_vm2, %v763_v2  ;;  %770 = vmatpush3.bf16.msk.msra.mxu1 (!%p147_p6), %vm764_vm2, %v763_v2  ;;  %s1080_s9 = scalar_lea.vmem (!%p147_p6), [#allocation2], %s704_s8  }
  0x12   : > { %s179_s26 = scalar_select %p178_p7, %s1007_s25, 36 }
  0x13   : > { %s465_s10 = ssub.s32 (%p996_p4), 37, %s1007_s25  ;;  %s734_s11 = sshll.u32 (%p996_p4), %s984_s15, 6 }
  0x14   : > { %s706_s27 = sshll.u32 %s179_s26, 3  ;;  %p466_p8 = scmp.lt.s32.totalorder (%p996_p4), %s465_s10, 8 }
  0x15   : > { %s181_s30 = scalar_lea.vmem %s1177_s0, %s706_s27  ;;  %s1123_s17 = scalar_lea.vmem (%p996_p4), %s1180_s3, %s734_s11  }
  0x16   : > { %v192_v3 = vld [vmem:[%s181_s30] sm:$0xff]  ;;  %v193_v5 = vld [vmem:[%s181_s30 + $0x8] sm:$0xff]  ;;  %v194_v7 = vld [vmem:[%s181_s30 + $0x10] sm:$0xff] }
  0x17   : > { %v196_v4 = vld [vmem:[%s181_s30 + $0x20] sm:$0xff]  ;;  %751 = vmatprep.mubr.msk.f32.mxu0 %vm209_vm3, %v192_v3  ;;  %v197_v6 = vld [vmem:[%s181_s30 + $0x28] sm:$0xff]  ;;  %v198_v8 = vld [vmem:[%s181_s30 + $0x30] sm:$0xff] }
  0x18   : > { %757 = vmatprep.mubr.msk.f32.mxu1 %vm209_vm3, %v196_v4  ;;  %752 = vmatmul.mubr.msk.f32.vlgmr.msra.gmra.mrb[0].mxu0 %vm209_vm3, %v193_v5  ;;  %v195_v9 = vld [vmem:[%s181_s30 + $0x18] sm:$0xff] }
  0x19   : > { %758 = vmatmul.mubr.msk.f32.vlgmr.msra.gmra.mrb[0].mxu1 %vm209_vm3, %v197_v6  ;;  %754 = vmatprep.mubr.msk.f32.mxu0 %vm209_vm3, %v194_v7  ;;  %v199_v10 = vld [vmem:[%s181_s30 + $0x38] sm:$0xff] }
  0x1a   : > { %760 = vmatprep.mubr.msk.f32.mxu1 %vm209_vm3, %v198_v8 }
  0x1c   : > { %755 = vmatmul.mubr.msk.f32.gmra.mrb[2].mxu0 %vm209_vm3, %v195_v9 }
  0x1d   : > { %761 = vmatmul.mubr.msk.f32.gmra.mrb[2].mxu1 %vm209_vm3, %v199_v10 }
  0xeb   : > { %v753_v12 = vpop.f32.mrb[0].mxu0 }
  0xec   : > { %v759_v13 = vpop.f32.mrb[0].mxu1  ;;  %v1025_v14 = vadd.f32 %v753_v12, %v707_v11  ;;  %v304_v16 = vpop.f32.mrb[1].mxu0 }
  0xed   : > { %v1027_v15 = vadd.f32 %v759_v13, %v707_v11  ;;  %v324_v17 = vpop.f32.mrb[1].mxu1  ;;  %v1029_v18 = vadd.f32 %v707_v11, %v304_v16 }
  0xee   : > { %v1031_v19 = vadd.f32 %v707_v11, %v324_v17  ;;  %v344_v20 = vmax.f32 %v1025_v14, 0.0 }
  0xef   : > { %v348_v21 = vmax.f32 %v1027_v15, 0.0  ;;  %v343_v22 = vmax.f32 %v1029_v18, 0.0  ;;  %v756_v24 = vpop.f32.mrb[2].mxu0 }
  0xf0   : > { %v347_v23 = vmax.f32 %v1031_v19, 0.0  ;;  %v762_v25 = vpop.f32.mrb[2].mxu1  ;;  %v359_v26 = vsel %vm351_vm4, %v344_v20, -inf  ;;  %v1043_v28 = vadd.f32 %v756_v24, %v707_v11  ;;  %v314_v30 = vpop.f32.mrb[3].mxu0 }
  0xf1   : > { %v387_v27 = vsel %vm351_vm4, %v348_v21, -inf  ;;  %v1045_v29 = vadd.f32 %v762_v25, %v707_v11  ;;  %v334_v31 = vpop.f32.mrb[3].mxu1  ;;  %v360_v32 = vrot.slane %v359_v26, 4  ;;  %v352_v34 = vsel %vm351_vm4, %v343_v22, -inf }
  0xf2   : > { %v388_v33 = vrot.slane %v387_v27, 4  ;;  %v380_v35 = vsel %vm351_vm4, %v347_v23, -inf  ;;  %v353_v36 = vrot.slane %v352_v34, 4  ;;  %v346_v38 = vmax.f32 %v1043_v28, 0.0 }
  0xf3   : > { %v381_v37 = vrot.slane %v380_v35, 4  ;;  %v350_v39 = vmax.f32 %v1045_v29, 0.0  ;;  %v361_v40 = vmax.f32 %v359_v26, %v360_v32  ;;  %v1055_v42 = vadd.f32 %v707_v11, %v314_v30 }
  0xf4   : > { %v389_v41 = vmax.f32 %v387_v27, %v388_v33  ;;  %v1057_v43 = vadd.f32 %v707_v11, %v334_v31  ;;  %v354_v44 = vmax.f32 %v352_v34, %v353_v36  ;;  %v373_v46 = vsel %vm351_vm4, %v346_v38, -inf }
  0xf5   : > { %v382_v45 = vmax.f32 %v380_v35, %v381_v37  ;;  %v401_v47 = vsel %vm351_vm4, %v350_v39, -inf  ;;  %v374_v48 = vrot.slane %v373_v46, 4  ;;  %v345_v50 = vmax.f32 %v1055_v42, 0.0 }
  0xf6   : > { %v402_v49 = vrot.slane %v401_v47, 4  ;;  %v349_v51 = vmax.f32 %v1057_v43, 0.0  ;;  %v355_v52 = vrot.slane %v354_v44, 2  ;;  %v390_v54 = vrot.slane %v389_v41, 2 }
  0xf7   : > { %v383_v53 = vrot.slane %v382_v45, 2  ;;  %v362_v55 = vrot.slane %v361_v40, 2  ;;  %v375_v56 = vmax.f32 %v373_v46, %v374_v48  ;;  %v366_v58 = vsel %vm351_vm4, %v345_v50, -inf }
  0xf8   : > { %v403_v57 = vmax.f32 %v401_v47, %v402_v49  ;;  %v394_v59 = vsel %vm351_vm4, %v349_v51, -inf  ;;  %v367_v60 = vrot.slane %v366_v58, 4  ;;  %v391_v62 = vmax.f32 %v389_v41, %v390_v54 }
  0xf9   : > { %v395_v61 = vrot.slane %v394_v59, 4  ;;  %v363_v63 = vmax.f32 %v361_v40, %v362_v55  ;;  %v376_v0 = vrot.slane %v375_v56, 2  ;;  %v356_v1 = vmax.f32 %v354_v44, %v355_v52 }
  0xfa   : > { %v368_v2 = vmax.f32 %v366_v58, %v367_v60  ;;  %v392_v4 = vrot.slane %v391_v62, 1  ;;  %v404_v6 = vrot.slane %v403_v57, 2  ;;  %v384_v9 = vmax.f32 %v382_v45, %v383_v53 }
  0xfb   : > { %v396_v3 = vmax.f32 %v394_v59, %v395_v61  ;;  %v364_v5 = vrot.slane %v363_v63, 1  ;;  %v377_v7 = vmax.f32 %v375_v56, %v376_v0  ;;  %v357_v8 = vrot.slane %v356_v1, 1 }
  0xfc   : > { %v369_v10 = vrot.slane %v368_v2, 2  ;;  %v393_v12 = vmax.f32 %v391_v62, %v392_v4  ;;  %v385_v25 = vrot.slane %v384_v9, 1  ;;  %v405_v30 = vmax.f32 %v403_v57, %v404_v6 }
  0xfd   : > { %v397_v11 = vrot.slane %v396_v3, 2  ;;  %v365_v13 = vmax.f32 %v363_v63, %v364_v5  ;;  %v378_v16 = vrot.slane %v377_v7, 1  ;;  %v358_v26 = vmax.f32 %v356_v1, %v357_v8 }
  0xfe   : > { %426 = vrot.lane.b32.xlu1 %v393_v12, %s950_s6  ;;  %v370_v17 = vmax.f32 %v368_v2, %v369_v10  ;;  %v386_v33 = vmax.f32 %v384_v9, %v385_v25  ;;  %v406_v34 = vrot.slane %v405_v30, 1 }
  0xff   : > { %418 = vrot.lane.b32.xlu0 %v365_v13, %s950_s6  ;;  %v379_v24 = vmax.f32 %v377_v7, %v378_v16  ;;  %v398_v31 = vmax.f32 %v396_v3, %v397_v11 }
 0x100   : > { %v371_v27 = vrot.slane %v370_v17, 1  ;;  %v407_v36 = vmax.f32 %v405_v30, %v406_v34 }
 0x101   : > { %v399_v35 = vrot.slane %v398_v31, 1 }
 0x102   : > { %422 = vrot.lane.b32.xlu1 %v379_v24, %s950_s6  ;;  %v372_v32 = vmax.f32 %v370_v17, %v371_v27 }
 0x103   : > { %416 = vrot.lane.b32.xlu0 %v358_v26, %s950_s6  ;;  %v400_v37 = vmax.f32 %v398_v31, %v399_v35 }
 0x106   : > { %420 = vrot.lane.b32.xlu1 %v372_v32, %s950_s6 }
 0x107   : > { %424 = vrot.lane.b32.xlu0 %v386_v33, %s950_s6 }
 0x10a   : > { %430 = vrot.lane.b32.xlu1 %v407_v36, %s950_s6 }
 0x10b   : > { %428 = vrot.lane.b32.xlu0 %v400_v37, %s950_s6 }
 0x170   : > { %v427_v40 = vpop.permute.xlu1 %426 }
 0x171   : > { %v419_v41 = vpop.permute.xlu0 %418  ;;  %v445_v44 = vsel %vm351_vm4, %v348_v21, %v427_v40 }
 0x172   : > { %v441_v45 = vsel %vm351_vm4, %v344_v20, %v419_v41  ;;  %454 = vst.msk [vmem:[%s1080_s9 + $0x28] sm:$0xff] %vm448_vm5, %v445_v44 }
 0x173   : > { %450 = vst.msk [vmem:[%s1080_s9 + $0x8] sm:$0xff] %vm448_vm5, %v441_v45 }
 0x174   : > { %v423_v46 = vpop.permute.xlu1 %422 }
 0x175   : > { %v417_v15 = vpop.permute.xlu0 %416  ;;  %v443_v14 = vsel %vm351_vm4, %v346_v38, %v423_v46 }
 0x176   : > { %v440_v20 = vsel %vm351_vm4, %v343_v22, %v417_v15  ;;  %452 = vst.msk [vmem:[%s1080_s9 + $0x18] sm:$0xff] %vm448_vm5, %v443_v14 }
 0x177   : > { %449 = vst.msk [vmem:[%s1080_s9] sm:$0xff] %vm448_vm5, %v440_v20 }
 0x178   : > { %v421_v21 = vpop.permute.xlu1 %420 }
 0x179   : > { %v425_v47 = vpop.permute.xlu0 %424  ;;  %v442_v48 = vsel %vm351_vm4, %v345_v50, %v421_v21  ;;  %463 = sbr.rel (!%p996_p4) target bundleno = 433 (0x1b1), region = 36 }
 0x17a   : > { %v444_v28 = vsel %vm351_vm4, %v347_v23, %v425_v47  ;;  %451 = vst.msk [vmem:[%s1080_s9 + $0x10] sm:$0xff] %vm448_vm5, %v442_v48 }
 0x17b   : > { %453 = vst.msk [vmem:[%s1080_s9 + $0x20] sm:$0xff] %vm448_vm5, %v444_v28 }
 0x17c   : > { %v431_v18 = vpop.permute.xlu1 %430 }
 0x17d   : > { %v429_v22 = vpop.permute.xlu0 %428  ;;  %v447_v38 = vsel %vm351_vm4, %v350_v39, %v431_v18 }
 0x17e   : > { %v446_v42 = vsel %vm351_vm4, %v349_v51, %v429_v22  ;;  %456 = vst.msk [vmem:[%s1080_s9 + $0x38] sm:$0xff] %vm448_vm5, %v447_v38 }
 0x17f   : > { %455 = vst.msk [vmem:[%s1080_s9 + $0x30] sm:$0xff] %vm448_vm5, %v446_v42 }
 0x180   : > { %s1189_s10 = smov (!%p466_p8, %s465_s10), 8 }
 0x181   : > { %s719_s18 = sshll.u32 %s1189_s10, 7 }
 0x182   : > { %p722_p9 = scmp.eq.s32.totalorder %s719_s18, 0 }
 0x183   : > { %s1129_s21 = sshrl.u32 (!%p722_p9), %s1189_s10, 3 }
 0x184   : > { %474 = sbr.rel (%p722_p9) target bundleno = 433 (0x1b1), region = 40  ;;  %p723_p10 = scmp.le.s32.totalorder (!%p722_p9), %s1129_s21, 0 }
 0x18b   : > { %656 = sbr.rel (%p723_p10) target bundleno = 412 (0x19c), region = 116  ;;  %s1182_s15 = smov (!%p723_p10), %s1123_s17 }
 0x18c   : > { %s1183_s20 = smov (!%p723_p10), %s1080_s9  ;;  %s1138_s22 = smov (!%p723_p10), 0  }
 0x18d   : > { %s1140_s23 = smov (!%p723_p10), 0  }
 0x192 LB: >> { %v550_v19 = vld [vmem:[%s923_s20] sm:$0xff]  ;;  %v552_v23 = vld [vmem:[%s923_s20 + $0x8] sm:$0xff]  ;;  %v554_v29 = vld [vmem:[%s923_s20 + $0x10] sm:$0xff]  ;;  %s566_s24 = sadd.s32 1, %s927_s22  ;;  %s544_s23 = sadd.s32 1, %s931_s23   ;;  %s931_s23 = sphi %s1140_s23, %s544_s23   ;;  %s927_s22 = sphi %s1138_s22, %s1184_s22   ;;  %s923_s20 = sphi %s1183_s20, %s571_s20   ;;  %s919_s15 = sphi %s1182_s15, %s572_s15  }
 0x193   : >> { %551 = vst [vmem:[%s919_s15] sm:$0xff] %v550_v19  ;;  %553 = vst [vmem:[%s919_s15 + $0x8] sm:$0xff] %v552_v23  ;;  %v556_v39 = vld [vmem:[%s923_s20 + $0x18] sm:$0xff]  ;;  %v558_v43 = vld [vmem:[%s923_s20 + $0x20] sm:$0xff]  ;;  %p567_p11 = scmp.ge.s32.totalorder %s566_s24, %s1129_s21  ;;  %p543_p12 = scmp.ge.s32.totalorder %s544_s23, %s1129_s21 }
 0x194   : >> { %555 = vst [vmem:[%s919_s15 + $0x10] sm:$0xff] %v554_v29  ;;  %v560_v49 = vld [vmem:[%s923_s20 + $0x28] sm:$0xff]  ;;  %557 = vst [vmem:[%s919_s15 + $0x18] sm:$0xff] %v556_v39  ;;  %v562_v50 = vld [vmem:[%s923_s20 + $0x30] sm:$0xff] }
 0x195   : >> { %559 = vst [vmem:[%s919_s15 + $0x20] sm:$0xff] %v558_v43  ;;  %561 = vst [vmem:[%s919_s15 + $0x28] sm:$0xff] %v560_v49  ;;  %v564_v51 = vld [vmem:[%s923_s20 + $0x38] sm:$0xff]  ;;  %s1191_s24 = smov (%p567_p11, %s566_s24), 0  ;;  %546 = sbr.rel (!%p543_p12) target bundleno = 402 (0x192), region = 122 }
 0x196   : >> { %563 = vst [vmem:[%s919_s15 + $0x30] sm:$0xff] %v562_v50  ;;  %565 = vst [vmem:[%s919_s15 + $0x38] sm:$0xff] %v564_v51  ;;  %s724_s25 = sshll.u32 %s1191_s24, 6  ;;  %s1184_s22 = smov %s1191_s24 }
 0x197   : >> { %s571_s20 = scalar_lea.vmem %s1080_s9, %s724_s25 [#allocation2]   ;;  %s572_s15 = scalar_lea.vmem %s1123_s17, %s724_s25  }
 0x19c PF: > { %s1159_s26 = sand.u32 7, %s1189_s10   ;;  %s735_s27 = sshll.u32 %s1129_s21, 6 }
 0x19d   : > { %s577_s28 = scalar_lea.vmem %s1080_s9, %s735_s27 [#allocation2]   ;;  %s579_s29 = scalar_lea.vmem %s1123_s17, %s735_s27  }
 0x19e   : > { %p729_p13 = scmp.le.s32.totalorder %s1159_s26, 0 }
 0x19f   : > { %s933_s30 = smov (!%p729_p13), %s579_s29   ;;  %s937_s4 = smov (!%p729_p13), %s577_s28  }
 0x1a0   : > { %670 = sbr.rel (%p729_p13) target bundleno = 433 (0x1b1), region = 127  ;;  %s941_s5 = smov (!%p729_p13), 0  }
 0x1a1   : > { %s945_s6 = smov (!%p729_p13), 0  }
 0x1a7 LB: >> { %v589_v52 = vld [vmem:[%s939_s4] sm:$0xff]  ;;  %s591_s7 = sadd.s32 1, %s943_s5  ;;  %s583_s6 = sadd.s32 1, %s947_s6   ;;  %s947_s6 = sphi %s945_s6, %s583_s6   ;;  %s943_s5 = sphi %s941_s5, %s942_s5   ;;  %s939_s4 = sphi %s937_s4, %s596_s4   ;;  %s935_s30 = sphi %s933_s30, %s597_s30  }
 0x1a8   : >> { %590 = vst [vmem:[%s935_s30] sm:$0xff] %v589_v52  ;;  %p592_p0 = scmp.ge.s32.totalorder %s591_s7, %s1159_s26  ;;  %p582_p1 = scmp.ge.s32.totalorder %s583_s6, %s1159_s26 }
 0x1aa   : >> { %s1193_s7 = smov (%p592_p0, %s591_s7), 0  ;;  %585 = sbr.rel (!%p582_p1) target bundleno = 423 (0x1a7), region = 133 }
 0x1ab   : >> { %s730_s8 = sshll.u32 %s1193_s7, 3  ;;  %s942_s5 = smov %s1193_s7  }
 0x1ac   : >> { %s596_s4 = scalar_lea.vmem %s577_s28, %s730_s8 [#allocation2]   ;;  %s597_s30 = scalar_lea.vmem %s579_s29, %s730_s8  }
 0x1b1 PF: > { %p10_p2 = scmp.ge.s32.totalorder %s986_s16, 7   ;;  %s1185_s12 = smov %s911_s13 }
 0x1b2   : > { %s1186_s13 = smov %s994_s19  ;;  %s1187_s14 = smov %s986_s16 }
 0x1b3   :  { %12 = sbr.rel (!%p10_p2) target bundleno = 2 (0x2), region = 144 }

</bundles_post_ra>
